<compile_context>
chip_gen: v7x
topology: tpu7x:2x2x1
jax: 0.10.0
libtpu: 0.0.40
codegen_flags: <defaults>
</compile_context>

<pallas_src>
import math
from functools import partial

import jax
import jax.numpy as jnp
from jax.experimental import pallas as pl
from jax.experimental.pallas import tpu as pltpu


LN_EPS = 1e-5  # torch.nn.LayerNorm default


# ----------------------------- Pallas kernels -------------------------------

def _mlp_kernel_fused(x_ref, w1_ref, b1_ref, w2_ref, b2_ref, o_ref):
    """Linear -> ReLU -> Linear, whole hidden dim resident in VMEM."""
    xc = x_ref[...].astype(w1_ref.dtype)          # in-kernel bf16 cast (cheap VPU work under MXU)
    h = jnp.dot(xc, w1_ref[...], preferred_element_type=jnp.float32)
    h = jnp.maximum(h + b1_ref[...], 0.0)         # f32 bias add + ReLU
    y = jnp.dot(h.astype(w2_ref.dtype), w2_ref[...],
                preferred_element_type=jnp.float32)
    o_ref[...] = (y + b2_ref[...]).astype(o_ref.dtype)


def _mlp_kernel_fused_norm(x_ref, w1_ref, b1_ref, w2_ref, b2_ref, g_ref, beta_ref,
                           o_ref, *, dim_forward):
    """Linear -> LayerNorm -> ReLU -> Linear."""
    xc = x_ref[...].astype(w1_ref.dtype)
    h = jnp.dot(xc, w1_ref[...], preferred_element_type=jnp.float32) + b1_ref[...]
    # Two-pass LayerNorm stats over the TRUE feature count.  Padded hidden
    # columns are exactly zero (zero-padded W1 cols / b1) so they do not bias
    # the mean; the centered pass is masked so they do not bias the variance.
    inv_ff = 1.0 / float(dim_forward)
    mean = jnp.sum(h, axis=-1, keepdims=True) * inv_ff
    col = jax.lax.broadcasted_iota(jnp.int32, h.shape, h.ndim - 1)
    hc = jnp.where(col < dim_forward, h - mean, 0.0)
    var = jnp.sum(hc * hc, axis=-1, keepdims=True) * inv_ff
    hn = hc * jax.lax.rsqrt(var + LN_EPS)
    hn = hn * g_ref[...] + beta_ref[...]          # gamma/beta padded with 0 -> padded cols stay 0
    hn = jnp.maximum(hn, 0.0)
    y = jnp.dot(hn.astype(w2_ref.dtype), w2_ref[...],
                preferred_element_type=jnp.float32)
    o_ref[...] = (y + b2_ref[...]).astype(o_ref.dtype)


def _mlp_kernel_split(x_ref, w1_ref, b1_ref, w2_ref, b2_ref, o_ref, acc_ref):
    """norm=False path with the hidden (dim_forward) axis tiled on the grid.

    grid = (row_tiles, ff_tiles); step k: acc += relu(x @ W1[:, k] + b1[k]) @ W2[k, :].
    """
    k = pl.program_id(1)

    @pl.when(k == 0)
    def _init():
        acc_ref[...] = jnp.zeros_like(acc_ref)

    xc = x_ref[...].astype(w1_ref.dtype)
    h = jnp.dot(xc, w1_ref[...], preferred_element_type=jnp.float32)
    h = jnp.maximum(h + b1_ref[...], 0.0)
    acc_ref[...] += jnp.dot(h.astype(w2_ref.dtype), w2_ref[...],
                            preferred_element_type=jnp.float32)

    @pl.when(k == pl.num_programs(1) - 1)
    def _finalize():
        o_ref[...] = (acc_ref[...] + b2_ref[...]).astype(o_ref.dtype)


# ------------------------------- Helpers -------------------------------------

def _round_up(n, m):
    return ((n + m - 1) // m) * m


def _vmem_capacity_bytes():
    """Per-core VMEM capacity; generation-aware with a conservative fallback."""
    try:
        return int(pltpu.get_tpu_info().vmem_capacity_bytes)
    except Exception:
        return 64 << 20        # v7x per-TC VMEM; safe lower bound everywhere


def _invariant_spec(block_shape, single_buffer):
    """BlockSpec for an operand whose block never changes across the grid."""
    index_map = lambda *_: (0,) * len(block_shape)
    if single_buffer and hasattr(pl, "Buffered"):
        try:
            return pl.BlockSpec(block_shape, index_map,
                                pipeline_mode=pl.Buffered(1))
        except (TypeError, AttributeError):
            pass               # pipeline_mode not available in this JAX build
    return pl.BlockSpec(block_shape, index_map)


def prepare_mlp_params(params, *, norm, compute_dtype=jnp.bfloat16):
    """One-time lane-dense (128-multiple) pad + bf16 cast of MLP parameters.

    Call once at init and reuse across forward calls so the per-call wrapper
    does not re-read / re-write the full weight matrices every step.
    """
    if params.get("_prepared", False):
        return params
    w1 = jnp.asarray(params["w1"])
    w2 = jnp.asarray(params["w2"])
    in_model, dim_forward = w1.shape
    out_model = w2.shape[1]
    in_p = _round_up(in_model, 128)
    ff_p = _round_up(dim_forward, 128)
    out_p = _round_up(out_model, 128)

    def pad_row(v, width):
        v = jnp.asarray(v).reshape(1, -1).astype(jnp.float32)
        return jnp.pad(v, ((0, 0), (0, width - v.shape[1])))

    prep = {
        "_prepared": True,
        "norm": bool(norm),
        "in_model": in_model, "dim_forward": dim_forward, "out_model": out_model,
        "in_p": in_p, "ff_p": ff_p, "out_p": out_p,
        "compute_dtype": jnp.dtype(compute_dtype),
        "w1": jnp.pad(w1, ((0, in_p - in_model),
                           (0, ff_p - dim_forward))).astype(compute_dtype),
        "w2": jnp.pad(w2, ((0, ff_p - dim_forward),
                           (0, out_p - out_model))).astype(compute_dtype),
        "b1": pad_row(params["b1"], ff_p),
        "b2": pad_row(params["b2"], out_p),
    }
    if norm:
        # gamma/beta padded with 0 so padded hidden lanes stay exactly 0.
        prep["gamma"] = pad_row(params["gamma"], ff_p)
        prep["beta"] = pad_row(params["beta"], ff_p)
    return prep


# -------------------------------- Wrapper ------------------------------------

def mlp_pallas(x, params, *, norm, compute_dtype=jnp.bfloat16,
               block_rows=512, ff_block=None):
    """x: [..., in_model]. Returns [..., out_model] in x.dtype."""
    p = params if params.get("_prepared", False) else prepare_mlp_params(
        params, norm=norm, compute_dtype=compute_dtype)
    assert bool(norm) == p["norm"], "norm flag mismatch with prepared params"

    in_model, dim_forward, out_model = p["in_model"], p["dim_forward"], p["out_model"]
    in_p, ff_p, out_p = p["in_p"], p["ff_p"], p["out_p"]
    compute_dtype = p["compute_dtype"]

    lead_shape = x.shape[:-1]
    n_rows = int(math.prod(lead_shape))
    out_dtype = x.dtype
    x_bpe = jnp.dtype(x.dtype).itemsize
    o_bpe = jnp.dtype(out_dtype).itemsize
    c_bpe = jnp.dtype(compute_dtype).itemsize

    # --- generation-aware VMEM budget ----------------------------------------
    vmem_cap = _vmem_capacity_bytes()
    usable = max(min(int(0.875 * vmem_cap), vmem_cap - (8 << 20)), 32 << 20)

    # --- row tiling: aim for >=4 row-grid steps (v7x megacore + less padding) -
    if ff_p * 3 * 4 * block_rows > usable // 2:
        block_rows = min(block_rows, 256)   # bound the f32 hidden tile on small-VMEM parts
    tm = min(block_rows, max(8, _round_up(pl.cdiv(n_rows, 4), 8)))
    rows_p = _round_up(n_rows, tm)

    weight_bytes = (in_p * ff_p + ff_p * out_p) * c_bpe    # 1x when single-buffered
    small_bytes = (3 * ff_p + out_p) * 4

    # --- fused path vs. dim_forward-split path --------------------------------
    use_split = (not norm) and (ff_block is not None
                                or weight_bytes > int(0.7 * usable))
    tf = None
    if use_split:
        for cand in (ff_block, 4096, 2048, 1024, 512, 256, 128):
            if cand and 128 <= cand <= ff_p and ff_p % cand == 0:
                tf = int(cand)
                break
        if tf is None or tf == ff_p:
            use_split = False
    # TODO(synk): norm=True with weights that do not fit VMEM still takes the
    # fused path; it needs an in_model split (LayerNorm needs full-row stats).

    # --- input: pad only if required; bf16 cast happens inside the kernel -----
    x2d = x.reshape(n_rows, in_model)
    if rows_p != n_rows or in_p != in_model:
        x2d = jnp.pad(x2d, ((0, rows_p - n_rows), (0, in_p - in_model)))

    def run(single_buffer):
        if not use_split:
            grid = (rows_p // tm,)
            dims = ("parallel",)
            if norm:
                kernel = partial(_mlp_kernel_fused_norm, dim_forward=dim_forward)
                args = (x2d, p["w1"], p["b1"], p["w2"], p["b2"],
                        p["gamma"], p["beta"])
                extra = [_invariant_spec((1, ff_p), single_buffer),   # gamma
                         _invariant_spec((1, ff_p), single_buffer)]   # beta
            else:
                kernel = _mlp_kernel_fused
                args = (x2d, p["w1"], p["b1"], p["w2"], p["b2"])
                extra = []
            in_specs = [
                pl.BlockSpec((tm, in_p), lambda i: (i, 0)),           # x: streamed per row tile
                _invariant_spec((in_p, ff_p), single_buffer),         # W1: VMEM resident, 1 buffer
                _invariant_spec((1, ff_p), single_buffer),            # b1
                _invariant_spec((ff_p, out_p), single_buffer),        # W2: VMEM resident, 1 buffer
                _invariant_spec((1, out_p), single_buffer),           # b2
            ] + extra
            out_specs = pl.BlockSpec((tm, out_p), lambda i: (i, 0))
            scratch = []
            need = (weight_bytes * (1 if single_buffer else 2) + small_bytes
                    + 2 * tm * in_p * x_bpe + 2 * tm * out_p * o_bpe
                    + 3 * tm * ff_p * 4 + tm * out_p * 4)
        else:
            grid = (rows_p // tm, ff_p // tf)
            dims = ("parallel", "arbitrary")
            kernel = _mlp_kernel_split
            args = (x2d, p["w1"], p["b1"], p["w2"], p["b2"])
            in_specs = [
                pl.BlockSpec((tm, in_p), lambda i, k: (i, 0)),   # resident across k (index unchanged)
                pl.BlockSpec((in_p, tf), lambda i, k: (0, k)),   # W1 column tile
                pl.BlockSpec((1, tf), lambda i, k: (0, k)),      # b1 tile
                pl.BlockSpec((tf, out_p), lambda i, k: (k, 0)),  # W2 row tile
                _invariant_spec((1, out_p), single_buffer),      # b2
            ]
            out_specs = pl.BlockSpec((tm, out_p), lambda i, k: (i, 0))
            scratch = [pltpu.VMEM((tm, out_p), jnp.float32)]
            need = (2 * (in_p * tf + tf * out_p) * c_bpe + small_bytes
                    + 2 * tm * in_p * x_bpe + 2 * tm * out_p * o_bpe
                    + 3 * tm * tf * 4 + 2 * tm * out_p * 4)

        vmem_limit = int(max(16 << 20, min(need + (4 << 20), usable)))
        cost = pl.CostEstimate(
            flops=2 * rows_p * (in_p * ff_p + ff_p * out_p),
            transcendentals=rows_p if norm else 0,
            bytes_accessed=(rows_p * in_p * x_bpe + weight_bytes
                            + rows_p * out_p * o_bpe),
        )
        return pl.pallas_call(
            kernel,
            out_shape=jax.ShapeDtypeStruct((rows_p, out_p), out_dtype),
            grid=grid,
            in_specs=in_specs,
            out_specs=out_specs,
            scratch_shapes=scratch,
            compiler_params=pltpu.CompilerParams(
                dimension_semantics=dims,
                vmem_limit_bytes=vmem_limit,
            ),
            cost_estimate=cost,
        )(*args)

    try:
        out2d = run(single_buffer=True)
    except Exception:
        # Some JAX/Mosaic builds reject pl.Buffered(1) on pallas_call specs;
        # fall back to default double-buffering for the invariant operands.
        out2d = run(single_buffer=False)

    if rows_p != n_rows or out_p != out_model:
        out2d = out2d[:n_rows, :out_model]
    return out2d.reshape(*lead_shape, out_model)


# --------------------------- Parameter init ----------------------------------

def init_mlp_params(key, in_model, dim_forward, out_model, norm: bool):
    """Matches MLP.init_weights: xavier_uniform on Linear weights, biases = 0,
    LayerNorm weight=1 / bias=0 (untouched by init_weights: ndim == 1)."""
    k1, k2 = jax.random.split(key)

    def xavier_uniform(k, fan_in, fan_out):
        bound = math.sqrt(6.0 / (fan_in + fan_out))
        # stored as [fan_in, fan_out] (transposed relative to torch's [out, in])
        return jax.random.uniform(k, (fan_in, fan_out), jnp.float32, -bound, bound)

    params = {
        "w1": xavier_uniform(k1, in_model, dim_forward),
        "b1": jnp.zeros((1, dim_forward), jnp.float32),
        "w2": xavier_uniform(k2, dim_forward, out_model),
        "b2": jnp.zeros((1, out_model), jnp.float32),
    }
    if norm:
        params["gamma"] = jnp.ones((1, dim_forward), jnp.float32)
        params["beta"] = jnp.zeros((1, dim_forward), jnp.float32)
    return params


# ------------------------------ Reference -------------------------------------

def mlp_ref(x, params, *, norm: bool, compute_dtype=jnp.bfloat16):
    """Plain-JAX reference with the same bf16-operand / f32-accumulation scheme."""
    xc = x.astype(compute_dtype)
    w1 = params["w1"].astype(compute_dtype)
    w2 = params["w2"].astype(compute_dtype)
    h = jnp.dot(xc, w1, preferred_element_type=jnp.float32) + params["b1"]
    if norm:
        mean = jnp.mean(h, axis=-1, keepdims=True)
        var = jnp.mean((h - mean) ** 2, axis=-1, keepdims=True)
        h = (h - mean) * jax.lax.rsqrt(var + LN_EPS)
        h = h * params["gamma"] + params["beta"]
    h = jnp.maximum(h, 0.0)
    y = jnp.dot(h.astype(compute_dtype), w2, preferred_element_type=jnp.float32)
    return (y + params["b2"]).astype(x.dtype)


# --------------------------------- Main ---------------------------------------

if __name__ == "__main__":
    key = jax.random.PRNGKey(0)
    kx, kp = jax.random.split(key)

    batch, seq = 2, 8
    in_model, dim_forward, out_model = 32, 64, 32

    x = jax.random.normal(kx, (batch, seq, in_model), jnp.float32)

    # --- norm=True, fused path, pre-prepared (hoisted) params ---------------
    params_n = init_mlp_params(kp, in_model, dim_forward, out_model, norm=True)
    prep_n = prepare_mlp_params(params_n, norm=True)
    out = jax.block_until_ready(mlp_pallas(x, prep_n, norm=True))
    ref = mlp_ref(x, params_n, norm=True)
    assert out.shape == (batch, seq, out_model)
    assert jnp.allclose(out, ref, atol=2e-3, rtol=2e-3), "mismatch (norm=True)"

    # --- norm=False, fused path, raw params (auto-prepared inside) ----------
    params_f = init_mlp_params(kp, in_model, dim_forward, out_model, norm=False)
    out_f = jax.block_until_ready(mlp_pallas(x, params_f, norm=False))
    assert jnp.allclose(out_f, mlp_ref(x, params_f, norm=False),
                        atol=2e-3, rtol=2e-3), "mismatch (norm=False)"

    # --- norm=False, forced dim_forward-split path (accumulator kernel) -----
    params_s = init_mlp_params(jax.random.PRNGKey(1), in_model, 256, out_model,
                               norm=False)
    out_s = jax.block_until_ready(mlp_pallas(x, params_s, norm=False,
                                             ff_block=128))
    assert jnp.allclose(out_s, mlp_ref(x, params_s, norm=False),
                        atol=2e-3, rtol=2e-3), "mismatch (split path)"

    print("KERNEL_OK")
</pallas_src>

<mosaic_0001>
module attributes {stable_mosaic.version = 11 : i64} {
  func.func @_mlp_kernel_fused_norm(%arg0: i32, %arg1: memref<8x128xf32, #tpu.memory_space<vmem>>, %arg2: memref<128x128xbf16, #tpu.memory_space<vmem>>, %arg3: memref<1x128xf32, #tpu.memory_space<vmem>>, %arg4: memref<128x128xbf16, #tpu.memory_space<vmem>>, %arg5: memref<1x128xf32, #tpu.memory_space<vmem>>, %arg6: memref<1x128xf32, #tpu.memory_space<vmem>>, %arg7: memref<1x128xf32, #tpu.memory_space<vmem>>, %arg8: memref<8x128xf32, #tpu.memory_space<vmem>>) attributes {dimension_semantics = [#tpu.dimension_semantics<parallel>], iteration_bounds = array<i64: 2>, scalar_prefetch = 0 : i64, scratch_operands = 0 : i64, tpu.core_type = #tpu.core_type<tc>, window_params = [{transform_indices = @transform_0, window_bounds = array<i64: 8, 128>}, {pipeline_mode = #tpu.pipeline_mode<synchronous>, transform_indices = @transform_1, window_bounds = array<i64: 128, 128>}, {pipeline_mode = #tpu.pipeline_mode<synchronous>, transform_indices = @transform_2, window_bounds = array<i64: 1, 128>}, {pipeline_mode = #tpu.pipeline_mode<synchronous>, transform_indices = @transform_3, window_bounds = array<i64: 128, 128>}, {pipeline_mode = #tpu.pipeline_mode<synchronous>, transform_indices = @transform_4, window_bounds = array<i64: 1, 128>}, {pipeline_mode = #tpu.pipeline_mode<synchronous>, transform_indices = @transform_5, window_bounds = array<i64: 1, 128>}, {pipeline_mode = #tpu.pipeline_mode<synchronous>, transform_indices = @transform_6, window_bounds = array<i64: 1, 128>}, {transform_indices = @transform_7, window_bounds = array<i64: 8, 128>}]} {
    %c0 = arith.constant 0 : index
    %c0_0 = arith.constant 0 : index
    %0 = vector.load %arg1[%c0, %c0_0] : memref<8x128xf32, #tpu.memory_space<vmem>>, vector<8x128xf32>
    %1 = arith.truncf %0 : vector<8x128xf32> to vector<8x128xbf16>
    %c0_1 = arith.constant 0 : index
    %c0_2 = arith.constant 0 : index
    %2 = vector.load %arg2[%c0_1, %c0_2] : memref<128x128xbf16, #tpu.memory_space<vmem>>, vector<128x128xbf16>
    %cst = arith.constant dense<0.000000e+00> : vector<8x128xf32>
    %3 = tpu.matmul %1, %2, %cst {dimension_numbers = #tpu.dot_dimension_numbers<[1], [0], [0], [1], [0, 0, 1, 1], [], []>} : vector<8x128xbf16>, vector<128x128xbf16>, vector<8x128xf32> -> vector<8x128xf32>
    %c0_3 = arith.constant 0 : index
    %c0_4 = arith.constant 0 : index
    %4 = vector.load %arg3[%c0_3, %c0_4] : memref<1x128xf32, #tpu.memory_space<vmem>>, vector<1x128xf32>
    %5 = vector.broadcast %4 : vector<1x128xf32> to vector<8x128xf32>
    %6 = arith.addf %3, %5 : vector<8x128xf32>
    %cst_5 = arith.constant dense<0.000000e+00> : vector<8xf32>
    %7 = vector.multi_reduction <add>, %6, %cst_5 [1] : vector<8x128xf32> to vector<8xf32>
    %8 = vector.shape_cast %7 : vector<8xf32> to vector<8x1xf32>
    %cst_6 = arith.constant 1.562500e-02 : f32
    %9 = vector.broadcast %cst_6 : f32 to vector<8x1xf32>
    %10 = arith.mulf %8, %9 : vector<8x1xf32>
    %11 = tpu.iota {dimensions = array<i32: 1>} : vector<8x128xi32>
    %c64_i32 = arith.constant 64 : i32
    %12 = vector.broadcast %c64_i32 : i32 to vector<8x128xi32>
    %13 = arith.cmpi slt, %11, %12 : vector<8x128xi32>
    %14 = vector.broadcast %10 : vector<8x1xf32> to vector<8x128xf32>
    %15 = arith.subf %6, %14 : vector<8x128xf32>
    %cst_7 = arith.constant 0.000000e+00 : f32
    %16 = vector.broadcast %cst_7 : f32 to vector<8x128xf32>
    %17 = arith.select %13, %15, %16 : vector<8x128xi1>, vector<8x128xf32>
    %18 = arith.mulf %17, %17 : vector<8x128xf32>
    %cst_8 = arith.constant dense<0.000000e+00> : vector<8xf32>
    %19 = vector.multi_reduction <add>, %18, %cst_8 [1] : vector<8x128xf32> to vector<8xf32>
    %20 = vector.shape_cast %19 : vector<8xf32> to vector<8x1xf32>
    %cst_9 = arith.constant 1.562500e-02 : f32
    %21 = vector.broadcast %cst_9 : f32 to vector<8x1xf32>
    %22 = arith.mulf %20, %21 : vector<8x1xf32>
    %cst_10 = arith.constant 9.99999974E-6 : f32
    %23 = vector.broadcast %cst_10 : f32 to vector<8x1xf32>
    %24 = arith.addf %22, %23 : vector<8x1xf32>
    %25 = math.rsqrt %24 : vector<8x1xf32>
    %26 = vector.broadcast %25 : vector<8x1xf32> to vector<8x128xf32>
    %27 = arith.mulf %17, %26 : vector<8x128xf32>
    %c0_11 = arith.constant 0 : index
    %c0_12 = arith.constant 0 : index
    %28 = vector.load %arg6[%c0_11, %c0_12] : memref<1x128xf32, #tpu.memory_space<vmem>>, vector<1x128xf32>
    %29 = vector.broadcast %28 : vector<1x128xf32> to vector<8x128xf32>
    %30 = arith.mulf %27, %29 : vector<8x128xf32>
    %c0_13 = arith.constant 0 : index
    %c0_14 = arith.constant 0 : index
    %31 = vector.load %arg7[%c0_13, %c0_14] : memref<1x128xf32, #tpu.memory_space<vmem>>, vector<1x128xf32>
    %32 = vector.broadcast %31 : vector<1x128xf32> to vector<8x128xf32>
    %33 = arith.addf %30, %32 : vector<8x128xf32>
    %cst_15 = arith.constant 0.000000e+00 : f32
    %34 = vector.broadcast %cst_15 : f32 to vector<8x128xf32>
    %35 = arith.maximumf %33, %34 : vector<8x128xf32>
    %36 = arith.truncf %35 : vector<8x128xf32> to vector<8x128xbf16>
    %c0_16 = arith.constant 0 : index
    %c0_17 = arith.constant 0 : index
    %37 = vector.load %arg4[%c0_16, %c0_17] : memref<128x128xbf16, #tpu.memory_space<vmem>>, vector<128x128xbf16>
    %cst_18 = arith.constant dense<0.000000e+00> : vector<8x128xf32>
    %38 = tpu.matmul %36, %37, %cst_18 {dimension_numbers = #tpu.dot_dimension_numbers<[1], [0], [0], [1], [0, 0, 1, 1], [], []>} : vector<8x128xbf16>, vector<128x128xbf16>, vector<8x128xf32> -> vector<8x128xf32>
    %c0_19 = arith.constant 0 : index
    %c0_20 = arith.constant 0 : index
    %39 = vector.load %arg5[%c0_19, %c0_20] : memref<1x128xf32, #tpu.memory_space<vmem>>, vector<1x128xf32>
    %40 = vector.broadcast %39 : vector<1x128xf32> to vector<8x128xf32>
    %41 = arith.addf %38, %40 : vector<8x128xf32>
    %c0_21 = arith.constant 0 : index
    %c0_22 = arith.constant 0 : index
    %42 = vector.load %arg8[%c0_21, %c0_22] : memref<8x128xf32, #tpu.memory_space<vmem>>, vector<8x128xf32>
    tpu.vector_store %arg8[%c0_21, %c0_22], %41 {strides = array<i32>} : memref<8x128xf32, #tpu.memory_space<vmem>>, vector<8x128xf32>,
    return
  }
  func.func @transform_0(%arg0: i32) -> (i32, i32) {
    %c0_i32 = arith.constant 0 : i32
    %c0_i32_0 = arith.constant 0 : i32
    return %arg0, %c0_i32 : i32, i32
  }
  func.func @transform_1(%arg0: i32) -> (i32, i32) {
    %c0_i32 = arith.constant 0 : i32
    %c0_i32_0 = arith.constant 0 : i32
    %c0_i32_1 = arith.constant 0 : i32
    return %c0_i32, %c0_i32_0 : i32, i32
  }
  func.func @transform_2(%arg0: i32) -> (i32, i32) {
    %c0_i32 = arith.constant 0 : i32
    %c0_i32_0 = arith.constant 0 : i32
    %c0_i32_1 = arith.constant 0 : i32
    return %c0_i32, %c0_i32_0 : i32, i32
  }
  func.func @transform_3(%arg0: i32) -> (i32, i32) {
    %c0_i32 = arith.constant 0 : i32
    %c0_i32_0 = arith.constant 0 : i32
    %c0_i32_1 = arith.constant 0 : i32
    return %c0_i32, %c0_i32_0 : i32, i32
  }
  func.func @transform_4(%arg0: i32) -> (i32, i32) {
    %c0_i32 = arith.constant 0 : i32
    %c0_i32_0 = arith.constant 0 : i32
    %c0_i32_1 = arith.constant 0 : i32
    return %c0_i32, %c0_i32_0 : i32, i32
  }
  func.func @transform_5(%arg0: i32) -> (i32, i32) {
    %c0_i32 = arith.constant 0 : i32
    %c0_i32_0 = arith.constant 0 : i32
    %c0_i32_1 = arith.constant 0 : i32
    return %c0_i32, %c0_i32_0 : i32, i32
  }
  func.func @transform_6(%arg0: i32) -> (i32, i32) {
    %c0_i32 = arith.constant 0 : i32
    %c0_i32_0 = arith.constant 0 : i32
    %c0_i32_1 = arith.constant 0 : i32
    return %c0_i32, %c0_i32_0 : i32, i32
  }
  func.func @transform_7(%arg0: i32) -> (i32, i32) {
    %c0_i32 = arith.constant 0 : i32
    %c0_i32_0 = arith.constant 0 : i32
    return %arg0, %c0_i32 : i32, i32
  }
}

module attributes {stable_mosaic.version = 11 : i64} {
  func.func @_mlp_kernel_fused_norm(%arg0: i32, %arg1: memref<8x128xf32, #tpu.memory_space<vmem>>, %arg2: memref<128x128xbf16, #tpu.memory_space<vmem>>, %arg3: memref<1x128xf32, #tpu.memory_space<vmem>>, %arg4: memref<128x128xbf16, #tpu.memory_space<vmem>>, %arg5: memref<1x128xf32, #tpu.memory_space<vmem>>, %arg6: memref<1x128xf32, #tpu.memory_space<vmem>>, %arg7: memref<1x128xf32, #tpu.memory_space<vmem>>, %arg8: memref<8x128xf32, #tpu.memory_space<vmem>>) attributes {dimension_semantics = [#tpu.dimension_semantics<parallel>], iteration_bounds = array<i64: 2>, scalar_prefetch = 0 : i64, scratch_operands = 0 : i64, tpu.core_type = #tpu.core_type<tc>, window_params = [{transform_indices = @transform_0, window_bounds = array<i64: 8, 128>}, {pipeline_mode = #tpu.pipeline_mode<synchronous>, transform_indices = @transform_1, window_bounds = array<i64: 128, 128>}, {pipeline_mode = #tpu.pipeline_mode<synchronous>, transform_indices = @transform_2, window_bounds = array<i64: 1, 128>}, {pipeline_mode = #tpu.pipeline_mode<synchronous>, transform_indices = @transform_3, window_bounds = array<i64: 128, 128>}, {pipeline_mode = #tpu.pipeline_mode<synchronous>, transform_indices = @transform_4, window_bounds = array<i64: 1, 128>}, {pipeline_mode = #tpu.pipeline_mode<synchronous>, transform_indices = @transform_5, window_bounds = array<i64: 1, 128>}, {pipeline_mode = #tpu.pipeline_mode<synchronous>, transform_indices = @transform_6, window_bounds = array<i64: 1, 128>}, {transform_indices = @transform_7, window_bounds = array<i64: 8, 128>}]} {
    %c0 = arith.constant 0 : index
    %c0_0 = arith.constant 0 : index
    %0 = vector.load %arg1[%c0, %c0_0] : memref<8x128xf32, #tpu.memory_space<vmem>>, vector<8x128xf32>
    %1 = arith.truncf %0 : vector<8x128xf32> to vector<8x128xbf16>
    %c0_1 = arith.constant 0 : index
    %c0_2 = arith.constant 0 : index
    %2 = vector.load %arg2[%c0_1, %c0_2] : memref<128x128xbf16, #tpu.memory_space<vmem>>, vector<128x128xbf16>
    %cst = arith.constant dense<0.000000e+00> : vector<8x128xf32>
    %3 = tpu.matmul %1, %2, %cst {dimension_numbers = #tpu.dot_dimension_numbers<[1], [0], [0], [1], [0, 0, 1, 1], [], []>} : vector<8x128xbf16>, vector<128x128xbf16>, vector<8x128xf32> -> vector<8x128xf32>
    %c0_3 = arith.constant 0 : index
    %c0_4 = arith.constant 0 : index
    %4 = vector.load %arg3[%c0_3, %c0_4] : memref<1x128xf32, #tpu.memory_space<vmem>>, vector<1x128xf32>
    %5 = vector.broadcast %4 : vector<1x128xf32> to vector<8x128xf32>
    %6 = arith.addf %3, %5 : vector<8x128xf32>
    %cst_5 = arith.constant dense<0.000000e+00> : vector<8xf32>
    %7 = vector.multi_reduction <add>, %6, %cst_5 [1] : vector<8x128xf32> to vector<8xf32>
    %8 = vector.shape_cast %7 : vector<8xf32> to vector<8x1xf32>
    %cst_6 = arith.constant 1.562500e-02 : f32
    %9 = vector.broadcast %cst_6 : f32 to vector<8x1xf32>
    %10 = arith.mulf %8, %9 : vector<8x1xf32>
    %11 = tpu.iota {dimensions = array<i32: 1>} : vector<8x128xi32>
    %c64_i32 = arith.constant 64 : i32
    %12 = vector.broadcast %c64_i32 : i32 to vector<8x128xi32>
    %13 = arith.cmpi slt, %11, %12 : vector<8x128xi32>
    %14 = vector.broadcast %10 : vector<8x1xf32> to vector<8x128xf32>
    %15 = arith.subf %6, %14 : vector<8x128xf32>
    %cst_7 = arith.constant 0.000000e+00 : f32
    %16 = vector.broadcast %cst_7 : f32 to vector<8x128xf32>
    %17 = arith.select %13, %15, %16 : vector<8x128xi1>, vector<8x128xf32>
    %18 = arith.mulf %17, %17 : vector<8x128xf32>
    %cst_8 = arith.constant dense<0.000000e+00> : vector<8xf32>
    %19 = vector.multi_reduction <add>, %18, %cst_8 [1] : vector<8x128xf32> to vector<8xf32>
    %20 = vector.shape_cast %19 : vector<8xf32> to vector<8x1xf32>
    %cst_9 = arith.constant 1.562500e-02 : f32
    %21 = vector.broadcast %cst_9 : f32 to vector<8x1xf32>
    %22 = arith.mulf %20, %21 : vector<8x1xf32>
    %cst_10 = arith.constant 9.99999974E-6 : f32
    %23 = vector.broadcast %cst_10 : f32 to vector<8x1xf32>
    %24 = arith.addf %22, %23 : vector<8x1xf32>
    %25 = math.rsqrt %24 : vector<8x1xf32>
    %26 = vector.broadcast %25 : vector<8x1xf32> to vector<8x128xf32>
    %27 = arith.mulf %17, %26 : vector<8x128xf32>
    %c0_11 = arith.constant 0 : index
    %c0_12 = arith.constant 0 : index
    %28 = vector.load %arg6[%c0_11, %c0_12] : memref<1x128xf32, #tpu.memory_space<vmem>>, vector<1x128xf32>
    %29 = vector.broadcast %28 : vector<1x128xf32> to vector<8x128xf32>
    %30 = arith.mulf %27, %29 : vector<8x128xf32>
    %c0_13 = arith.constant 0 : index
    %c0_14 = arith.constant 0 : index
    %31 = vector.load %arg7[%c0_13, %c0_14] : memref<1x128xf32, #tpu.memory_space<vmem>>, vector<1x128xf32>
    %32 = vector.broadcast %31 : vector<1x128xf32> to vector<8x128xf32>
    %33 = arith.addf %30, %32 : vector<8x128xf32>
    %cst_15 = arith.constant 0.000000e+00 : f32
    %34 = vector.broadcast %cst_15 : f32 to vector<8x128xf32>
    %35 = arith.maximumf %33, %34 : vector<8x128xf32>
    %36 = arith.truncf %35 : vector<8x128xf32> to vector<8x128xbf16>
    %c0_16 = arith.constant 0 : index
    %c0_17 = arith.constant 0 : index
    %37 = vector.load %arg4[%c0_16, %c0_17] : memref<128x128xbf16, #tpu.memory_space<vmem>>, vector<128x128xbf16>
    %cst_18 = arith.constant dense<0.000000e+00> : vector<8x128xf32>
    %38 = tpu.matmul %36, %37, %cst_18 {dimension_numbers = #tpu.dot_dimension_numbers<[1], [0], [0], [1], [0, 0, 1, 1], [], []>} : vector<8x128xbf16>, vector<128x128xbf16>, vector<8x128xf32> -> vector<8x128xf32>
    %c0_19 = arith.constant 0 : index
    %c0_20 = arith.constant 0 : index
    %39 = vector.load %arg5[%c0_19, %c0_20] : memref<1x128xf32, #tpu.memory_space<vmem>>, vector<1x128xf32>
    %40 = vector.broadcast %39 : vector<1x128xf32> to vector<8x128xf32>
    %41 = arith.addf %38, %40 : vector<8x128xf32>
    %c0_21 = arith.constant 0 : index
    %c0_22 = arith.constant 0 : index
    %42 = vector.load %arg8[%c0_21, %c0_22] : memref<8x128xf32, #tpu.memory_space<vmem>>, vector<8x128xf32>
    tpu.vector_store %arg8[%c0_21, %c0_22], %41 {strides = array<i32>} : memref<8x128xf32, #tpu.memory_space<vmem>>, vector<8x128xf32>,
    return
  }
  func.func @transform_0(%arg0: i32) -> (i32, i32) {
    %c0_i32 = arith.constant 0 : i32
    %c0_i32_0 = arith.constant 0 : i32
    return %arg0, %c0_i32 : i32, i32
  }
  func.func @transform_1(%arg0: i32) -> (i32, i32) {
    %c0_i32 = arith.constant 0 : i32
    %c0_i32_0 = arith.constant 0 : i32
    %c0_i32_1 = arith.constant 0 : i32
    return %c0_i32, %c0_i32_0 : i32, i32
  }
  func.func @transform_2(%arg0: i32) -> (i32, i32) {
    %c0_i32 = arith.constant 0 : i32
    %c0_i32_0 = arith.constant 0 : i32
    %c0_i32_1 = arith.constant 0 : i32
    return %c0_i32, %c0_i32_0 : i32, i32
  }
  func.func @transform_3(%arg0: i32) -> (i32, i32) {
    %c0_i32 = arith.constant 0 : i32
    %c0_i32_0 = arith.constant 0 : i32
    %c0_i32_1 = arith.constant 0 : i32
    return %c0_i32, %c0_i32_0 : i32, i32
  }
  func.func @transform_4(%arg0: i32) -> (i32, i32) {
    %c0_i32 = arith.constant 0 : i32
    %c0_i32_0 = arith.constant 0 : i32
    %c0_i32_1 = arith.constant 0 : i32
    return %c0_i32, %c0_i32_0 : i32, i32
  }
  func.func @transform_5(%arg0: i32) -> (i32, i32) {
    %c0_i32 = arith.constant 0 : i32
    %c0_i32_0 = arith.constant 0 : i32
    %c0_i32_1 = arith.constant 0 : i32
    return %c0_i32, %c0_i32_0 : i32, i32
  }
  func.func @transform_6(%arg0: i32) -> (i32, i32) {
    %c0_i32 = arith.constant 0 : i32
    %c0_i32_0 = arith.constant 0 : i32
    %c0_i32_1 = arith.constant 0 : i32
    return %c0_i32, %c0_i32_0 : i32, i32
  }
  func.func @transform_7(%arg0: i32) -> (i32, i32) {
    %c0_i32 = arith.constant 0 : i32
    %c0_i32_0 = arith.constant 0 : i32
    return %arg0, %c0_i32 : i32, i32
  }
}

</mosaic_0001>

<bundles_post_ra>
// kernel: tpu_custom_call.1
= control target key start
LH: loop header
LB: loop body
LE: loop exit
PB: predicated region body
PF: predicated region fallthrough
CT: control target
= control target key end

     0   :  { %12 = vsyncpa [#allocation3], 0  ;;  %s1340_s0 = inlined_call_operand.hbm [shape: f32[16,128], index: 0, kind: input, shape index: {}]   ;;  %s1341_s1 = inlined_call_operand.hbm [shape: bf16[128,128], index: 1, kind: input, shape index: {}]   ;;  %s1342_s2 = inlined_call_operand.vmem [shape: f32[1,128], index: 2, kind: input, shape index: {}]   ;;  %s1343_s3 = inlined_call_operand.hbm [shape: bf16[128,128], index: 3, kind: input, shape index: {}]   ;;  %s1344_s4 = inlined_call_operand.vmem [shape: f32[1,128], index: 4, kind: input, shape index: {}]   ;;  %s1345_s5 = inlined_call_operand.vmem [shape: f32[1,128], index: 5, kind: input, shape index: {}]   ;;  %s1346_s6 = inlined_call_operand.vmem [shape: f32[1,128], index: 6, kind: input, shape index: {}]   ;;  %s1347_s7 = inlined_call_operand.hbm [shape: f32[16,128], index: 7, kind: output, shape index: {}]  }
   0x1   :  { %14 = vsyncpa [#allocation3 + $0x1], 0 }
   0x2   :  { %15 = vsyncpa [#allocation6], 0 }
   0x3   :  { %16 = vsyncpa [#allocation4], 0 }
   0x4   :  { %18 = vsyncpa [#allocation4 + $0x1], 0  ;;  %s1074_s24 = smov 0   ;;  %s1076_s25 = smov 0  }
   0x5   :  { %s1078_s26 = smov 0   ;;  %s1080_s27 = smov 0  }
   0x6 LB: > { %s1095_s28 = sadd.s32 4294967295, %s1024_s27   ;;  %s685_s29 = sadd.s32 4294967294, %s1024_s27   ;;  %s1024_s27 = sphi %s1080_s27, %s1367_s27   ;;  %s1020_s26 = sphi %s1078_s26, %s1366_s26   ;;  %s1016_s25 = sphi %s1076_s25, %s1365_s25   ;;  %s1012_s24 = sphi %s1074_s24, %s1364_s24  }
   0x7   : > { %p44_p0 = scmp.ne.s32.totalorder %s1016_s25, %s1012_s24  ;;  %p1348_p1 = scmp.eq.s32.totalorder %s1095_s28, 0 }
   0x8   : > { %p200_p3 = scmp.eq.s32.totalorder %s685_s29, 1  ;;  %p686_p5 = scmp.ge.s32.totalorder %s1024_s27, 1 }
   0x9   : > { %p1104_p4 = por %p1348_p1, %p44_p0  ;;  %p207_p7 = scmp.lt.s32.totalorder %s1024_s27, 3 }
   0xa   : > { %p1109_p6 = por %p200_p3, %p44_p0  ;;  %s1026_s10 = smov [#allocation5]  }
   0xb   : > { %s1351_s30 = scalar_select %p1104_p4, 1, 0 }
   0xc   : > { %s1352_s8 = scalar_select %p1109_p6, 1, 0 }
   0xd   : > { %p1114_p8 = pnand %p686_p5, %p207_p7  ;;  %s219_s11 = sshll.u32 %s1026_s10, 4  ;;  %s1118_s11 = int_to_ptr.vmem [resolvable:$true] %s219_s11 }
   0xe   : > { %s1027_s13 = smov [#allocation7]   ;;  %s868_s17 = scalar_lea.hbm %s1341_s1, 1024 }
   0xf   : > { %p791_p9 = pneg %p1114_p8  ;;  %s235_s14 = sshll.u32 %s1027_s13, 4  ;;  %s1129_s14 = int_to_ptr.vmem [resolvable:$true] %s235_s14 }
  0x10   : > { %p869_p12 = scmp.ne.s32.totalorder %s1341_s1, %s868_s17  ;;  %p875_p5 = scmp.lt.u32.totalorder %s868_s17, %s1341_s1 }
  0x11   : > { %p1125_p11 = pnand %p791_p9, %p1348_p1 }
  0x13   : > { %p870_p13 = pneg %p1125_p11 }
  0x15   : > { %p871_p0 = pnand %p870_p13, %p869_p12 }
  0x17   : > { %p872_p3 = pneg %p871_p0 }
  0x19   : > { %p877_p7 = pnand %p875_p5, %p872_p3 }
  0x1b   : > { %880 = shalt.err (!%p877_p7)
}
  0x1c   : > { %s881_s22 = scalar_lea.vmem %s1118_s11, 1024  ;;  %p889_p2 = scmp.lt.s32.totalorder %s1118_s11, %s1118_s11 }
  0x1d   : > { %p882_p9 = scmp.ne.s32.totalorder %s1118_s11, %s881_s22  ;;  %p890_p12 = scmp.lt.s32.totalorder %s881_s22, %s881_s22 }
  0x1f   : > { %p884_p10 = pnand %p882_p9, %p870_p13  ;;  %p891_p0 = por %p890_p12, %p889_p2 }
  0x21   : > { %p885_p1 = pneg %p884_p10 }
  0x23   : > { %p892_p6 = pnand %p891_p0, %p885_p1 }
  0x25   : > { %895 = shalt.err (!%p892_p6)
}
  0x26   : > { %s1028_s23 = smov 64   ;;  %s1029_s29 = smov 4  }
  0x27   : > { %794 = dma.hbm_to_vmem [thread:$0]  (!%p1125_p11), %s1341_s1, 1024, %s1118_s11, [#allocation6], %s1028_s23, %s1028_s23, %s1029_s29  }
  0x28   : > { %s896_s17 = scalar_lea.hbm %s1343_s3, 1024 }
  0x29   : > { %p897_p2 = scmp.ne.s32.totalorder %s1343_s3, %s896_s17  ;;  %p903_p10 = scmp.lt.u32.totalorder %s896_s17, %s1343_s3 }
  0x2b   : > { %p899_p1 = pnand %p897_p2, %p870_p13 }
  0x2d   : > { %p900_p6 = pneg %p899_p1 }
  0x2f   : > { %p905_p3 = pnand %p903_p10, %p900_p6 }
  0x31   : > { %908 = shalt.err (!%p905_p3)
}
  0x32   : > { %s909_s11 = scalar_lea.vmem %s1129_s14, 1024  ;;  %p917_p12 = scmp.lt.s32.totalorder %s1129_s14, %s1129_s14 }
  0x33   : > { %p910_p5 = scmp.ne.s32.totalorder %s1129_s14, %s909_s11  ;;  %p918_p0 = scmp.lt.s32.totalorder %s909_s11, %s909_s11 }
  0x35   : > { %p912_p7 = pnand %p910_p5, %p870_p13  ;;  %p919_p2 = por %p918_p0, %p917_p12 }
  0x37   : > { %p913_p9 = pneg %p912_p7 }
  0x39   : > { %p920_p1 = pnand %p919_p2, %p913_p9 }
  0x3b   : > { %923 = shalt.err (!%p920_p1)
}
  0x3c   : > { %797 = dma.hbm_to_vmem [thread:$0]  (!%p1125_p11), %s1343_s3, 1024, %s1129_s14, [#allocation6], %s1028_s23, %s1028_s23, %s1029_s29  }
  0x3d   : > { %s1184_s13 = sadd.s32 1, %s1024_s27   ;;  %s31_s12 = sadd.s32 1, %s1020_s26 }
  0x3e   : > { %s28_s15 = ssub.s32 %s1024_s27, %s1184_s13  ;;  %p38_p13 = scmp.ne.s32.totalorder %s1020_s26, %s1016_s25 }
  0x3f   : > { %p29_p6 = scmp.eq.s32.totalorder %s28_s15, 0  ;;  %p39_p10 = scmp.eq.s32.totalorder %s1024_s27, 0 }
  0x40   : > { %p1355_p3 = scmp.eq.s32.totalorder %s1095_s28, 1  ;;  %p808_p7 = scmp.lt.s32.totalorder %s1024_s27, 2 }
  0x41   : > { %s1200_s17 = scalar_select %p29_p6, %s1020_s26, %s31_s12  }
  0x42   : > { %p1194_p5 = por %p1355_p3, %p38_p13  ;;  %p40_p9 = por %p39_p10, %p38_p13 }
  0x43   : > { %s258_s18 = sand.u32 1, %s1020_s26   ;;  %s691_s14 = sshll.u32 %s1024_s27, 7 }
  0x44   : > { %s1356_s16 = scalar_select %p1194_p5, 1, 0 }
  0x45   : > { %s690_s19 = sshll.u32 %s258_s18, 3  ;;  %s1207_s20 = scalar_lea.hbm %s1340_s0, %s691_s14 }
  0x46   : > { %s262_s21 = scalar_lea.vmem [#allocation2], %s690_s19  ;;  %p1211_p11 = pnand %p808_p7, %p40_p9 }
  0x47   : > { %s269_s11 = sshll.u32 %s262_s21, 4  ;;  %s259_s10 = scalar_lea.sflag [#allocation3], %s258_s18  ;;  %s1209_s11 = int_to_ptr.vmem [resolvable:$true] %s269_s11 }
  0x48   : > { %s924_s12 = scalar_lea.hbm %s1207_s20, 128  ;;  %p926_p0 = pneg %p1211_p11 }
  0x49   : > { %p925_p12 = scmp.ne.s32.totalorder %s1207_s20, %s924_s12  ;;  %s929_s14 = scalar_lea.hbm %s1340_s0, 256 }
  0x4a   : > { %p930_p13 = scmp.lt.u32.totalorder %s1207_s20, %s1340_s0  ;;  %p931_p6 = scmp.lt.u32.totalorder %s929_s14, %s924_s12 }
  0x4b   : > { %p927_p2 = pnand %p926_p0, %p925_p12  ;;  %p933_p3 = scmp.lt.u32.totalorder %s924_s12, %s1207_s20 }
  0x4c   : > { %p932_p10 = por %p931_p6, %p930_p13 }
  0x4d   : > { %p928_p1 = pneg %p927_p2 }
  0x4e   : > { %p934_p7 = por %p933_p3, %p932_p10 }
  0x50   : > { %p935_p9 = pnand %p934_p7, %p928_p1 }
  0x52   : > { %938 = shalt.err (!%p935_p9)
}
  0x53   : > { %s939_s18 = scalar_lea.vmem %s1209_s11, 128  ;;  %s1030_s21 = smov [#allocation2]  }
  0x54   : > { %p940_p12 = scmp.ne.s32.totalorder %s1209_s11, %s939_s18  ;;  %s944_s15 = sshll.u32 %s1030_s21, 4  ;;  %s945_s15 = int_to_ptr.vmem [resolvable:$false] %s944_s15 }
  0x55   : > { %s946_s19 = scalar_lea.vmem %s945_s15, 256  ;;  %p947_p4 = scmp.lt.s32.totalorder %s1209_s11, %s945_s15 }
  0x56   : > { %p942_p2 = pnand %p940_p12, %p926_p0  ;;  %p948_p13 = scmp.lt.s32.totalorder %s946_s19, %s939_s18 }
  0x58   : > { %p943_p5 = pneg %p942_p2  ;;  %p949_p6 = por %p948_p13, %p947_p4 }
  0x5a   : > { %p950_p10 = pnand %p949_p6, %p943_p5 }
  0x5c   : > { %953 = shalt.err (!%p950_p10)
}
  0x5d   : > { %801 = dma.hbm_to_vmem [thread:$0]  (!%p1211_p11), %s1207_s20, 128, %s1209_s11, %s259_s10  }
  0x5e   : > { %278 = sbr.rel (%p1114_p8) target bundleno = 897 (0x381), region = 48  ;;  %s1243_s12 = sand.u32 (!%p1114_p8), 1, %s1016_s25  }
  0x5f   : > { %s693_s14 = sshll.u32 (!%p1114_p8), %s1243_s12, 3  ;;  %s281_s23 = scalar_lea.sflag (!%p1114_p8), [#allocation3], %s1243_s12 }
  0x60   : > { %s1249_s29 = scalar_lea.vmem (!%p1114_p8), [#allocation2], %s693_s14  ;;  %p1358_p4 = scmp.ne.s32.totalorder (!%p1114_p8), %s1351_s30, 0 }
  0x65   : > { %999 = dma.done.wait (%p1358_p4), %s281_s23, 128  }
  0x66   : > { %1001 = vsyncadd (%p1358_p4), %s281_s23, 4294967168  ;;  %p1359_p5 = scmp.eq.s32.totalorder %s1095_s28, 0 }
  0x68   : > { %1003 = dma.done.wait (%p1359_p5), [#allocation6], 2048   ;;  %p1360_p8 = pmov %p1359_p5 }
  0x69   : > { %v1031_v0 = vmov 0.0   ;;  %vm1032_vm0 = vmmov 0   ;;  %v850_v1 = vld [vmem:[#allocation5] sm:$0xff]   ;;  %v851_v2 = vld [vmem:[#allocation5 + $0x8] sm:$0xff]   ;;  %v852_v3 = vld [vmem:[#allocation5 + $0x10] sm:$0xff]   ;;  %v440_v19 = vlaneseq  ;;  %s718_s15 = sshll.u32 %s1095_s28, 7 }
  0x6a   : > { %1005 = vsyncadd (%p1360_p8), [#allocation6], 4294965248  ;;  %739 = vmatprep.subr.bf16.mxu0 %v1031_v0  ;;  %755 = vmatprep.mubr.msk.bf16.mxu0 %vm1032_vm0, %v1031_v0  ;;  %v853_v4 = vld [vmem:[#allocation5 + $0x18] sm:$0xff]   ;;  %v854_v5 = vld [vmem:[#allocation5 + $0x20] sm:$0xff]   ;;  %s322_s19 = scalar_lea.vmem [#allocation8], %s693_s14  ;;  %s1296_s9 = scalar_lea.hbm %s1347_s7, %s718_s15 }
  0x6b   : > { %759 = vmatprep.subr.bf16.mxu1 %v1031_v0  ;;  %775 = vmatprep.mubr.msk.bf16.mxu1 %vm1032_vm0, %v1031_v0  ;;  %v855_v6 = vld [vmem:[#allocation5 + $0x28] sm:$0xff]   ;;  %v856_v7 = vld [vmem:[#allocation5 + $0x30] sm:$0xff]   ;;  %v857_v8 = vld [vmem:[#allocation5 + $0x38] sm:$0xff]   ;;  %v441_v20 = vand.u32 127, %v440_v19  ;;  %s596_s23 = sshll.u32 %s322_s19, 4  ;;  %s583_s28 = scalar_lea.sflag [#allocation4], %s1243_s12  ;;  %s1298_s23 = int_to_ptr.vmem [resolvable:$true] %s596_s23 }
  0x6c   : > { %740 = vmatpush3.bf16.msra.mxu0 %v850_v1  ;;  %v324_v9 = vld [vmem:[%s1249_s29] sm:$0xff]  ;;  %v858_v17 = vld [vmem:[#allocation7] sm:$0xff]   ;;  %v859_v18 = vld [vmem:[#allocation7 + $0x8] sm:$0xff]   ;;  %s954_s20 = scalar_lea.vmem %s1298_s23, 128  ;;  %p1361_p0 = scmp.ne.s32.totalorder %s1356_s16, 0 }
  0x6d   : > { %741 = vmatprep.subr.bf16.mxu0 %v1031_v0  ;;  %v325_v10 = vpack.c.bf16 %v324_v9, %v324_v9  ;;  %v697_v11 = vld [vmem:[%s1342_s2] ss:$0 sm:$0xff]  ;;  %760 = vmatpush3.bf16.msra.mxu1 %v858_v17  ;;  %vm442_vm1 = vcmp.lt.s32.totalorder %v441_v20, 64  ;;  %v861_v27 = vld [vmem:[#allocation7 + $0x18] sm:$0xff]   ;;  %v862_v28 = vld [vmem:[#allocation7 + $0x20] sm:$0xff]   ;;  %p955_p11 = scmp.ne.s32.totalorder %s1298_s23, %s954_s20  ;;  %s1033_s14 = smov [#allocation8]  }
  0x6e   : > { %761 = vmatprep.subr.bf16.mxu1 %v1031_v0  ;;  %v860_v26 = vld [vmem:[#allocation7 + $0x10] sm:$0xff]   ;;  %v863_v29 = vld [vmem:[#allocation7 + $0x28] sm:$0xff]   ;;  %v865_v31 = vld [vmem:[#allocation7 + $0x38] sm:$0xff]   ;;  %s958_s11 = sshll.u32 %s1033_s14, 4  ;;  %s959_s11 = int_to_ptr.vmem [resolvable:$false] %s958_s11 }
  0x6f   : > { %v864_v30 = vld [vmem:[#allocation7 + $0x30] sm:$0xff]   ;;  %p956_p1 = pnand %p955_p11, %p1361_p0  ;;  %s960_s22 = scalar_lea.vmem %s959_s11, 256 }
  0x70   : > { %742 = vmatpush3.bf16.msra.mxu0 %v851_v2  ;;  %v706_v36 = vld [vmem:[%s1345_s5] ss:$0 sm:$0xff]  ;;  %p961_p7 = scmp.lt.s32.totalorder %s1298_s23, %s959_s11  ;;  %p962_p9 = scmp.lt.s32.totalorder %s960_s22, %s954_s20 }
  0x71   : > { %743 = vmatprep.subr.bf16.mxu0 %v1031_v0  ;;  %762 = vmatpush3.bf16.msra.mxu1 %v859_v18  ;;  %v707_v38 = vld [vmem:[%s1346_s6] ss:$0 sm:$0xff]  ;;  %p957_p3 = pneg %p956_p1 }
  0x72   : > { %763 = vmatprep.subr.bf16.mxu1 %v1031_v0  ;;  %v708_v43 = vld [vmem:[%s1344_s4] ss:$0 sm:$0xff]  ;;  %p963_p12 = por %p962_p9, %p961_p7 }
  0x74   : > { %744 = vmatpush3.bf16.msra.mxu0 %v852_v3  ;;  %p964_p2 = pnand %p963_p12, %p957_p3 }
  0x75   : > { %745 = vmatprep.subr.bf16.mxu0 %v1031_v0  ;;  %764 = vmatpush3.bf16.msra.mxu1 %v860_v26 }
  0x76   : > { %765 = vmatprep.subr.bf16.mxu1 %v1031_v0 }
  0x78   : > { %746 = vmatpush3.bf16.msra.mxu0 %v853_v4 }
  0x79   : > { %747 = vmatprep.subr.bf16.mxu0 %v1031_v0  ;;  %766 = vmatpush3.bf16.msra.mxu1 %v861_v27 }
  0x7a   : > { %767 = vmatprep.subr.bf16.mxu1 %v1031_v0 }
  0x7c   : > { %748 = vmatpush3.bf16.msra.mxu0 %v854_v5 }
  0x7d   : > { %749 = vmatprep.subr.bf16.mxu0 %v1031_v0  ;;  %768 = vmatpush3.bf16.msra.mxu1 %v862_v28 }
  0x7e   : > { %769 = vmatprep.subr.bf16.mxu1 %v1031_v0 }
  0x80   : > { %750 = vmatpush3.bf16.msra.mxu0 %v855_v6 }
  0x81   : > { %751 = vmatprep.subr.bf16.mxu0 %v1031_v0  ;;  %770 = vmatpush3.bf16.msra.mxu1 %v863_v29 }
  0x82   : > { %771 = vmatprep.subr.bf16.mxu1 %v1031_v0 }
  0x84   : > { %752 = vmatpush3.bf16.msra.mxu0 %v856_v7 }
  0x85   : > { %753 = vmatprep.subr.bf16.mxu0 %v1031_v0  ;;  %772 = vmatpush3.bf16.msra.mxu1 %v864_v30 }
  0x86   : > { %773 = vmatprep.subr.bf16.mxu1 %v1031_v0 }
  0x88   : > { %754 = vmatpush3.bf16.msra.mxu0 %v857_v8 }
  0x89   : > { %774 = vmatpush3.bf16.msra.mxu1 %v865_v31 }
  0x8b   : > { %756 = vmatmul.mubr.bf16.vlgmr.msra.gmra.mrb[0].mxu0 %v325_v10 }
 0x15e   : > { %v431_v12 = vpop.f32.mrb[0].mxu0 }
 0x15f   : > { %v432_v13 = vadd.f32 %v697_v11, %v431_v12  ;;  %v757_v14 = vpop.f32.mrb[1].mxu0 }
 0x160   : > { %v434_v15 = vpop.f32.mrb[2].mxu0 }
 0x161   : > { %437 = vadd.xlane.f32.xlu0 %v432_v13  ;;  %v758_v16 = vpop.f32.mrb[3].mxu0 }
 0x1ee   : > { %v438_v21 = vpop.xlane.xlu0 %437 }
 0x1ef   : > { %v439_v22 = vmul.f32 0.015625, %v438_v21 }
 0x1f1   : > { %v443_v23 = vsub.f32 %v432_v13, %v439_v22 }
 0x1f3   : > { %v444_v24 = vsel %vm442_vm1, %v443_v23, 0.0 }
 0x1f4   : > { %v445_v25 = vmul.f32 %v444_v24, %v444_v24 }
 0x1f6   : > { %446 = vadd.xlane.f32.xlu0 %v445_v25 }
 0x283   : > { %v447_v32 = vpop.xlane.xlu0 %446 }
 0x284   : > { %v448_v33 = vmul.f32 0.015625, %v447_v32 }
 0x286   : > { %v449_v34 = vadd.f32 1e-05, %v448_v33 }
 0x288   : > { %866 = vrsqrt.f32 %v449_v34 }
 0x292   : > { %v867_v35 = vpop.eup %866 }
 0x293   : > { %v451_v37 = vmul.f32 %v867_v35, %v444_v24 }
 0x295   : > { %v459_v39 = vmul.f32 %v706_v36, %v451_v37 }
 0x297   : > { %v467_v40 = vadd.f32 %v707_v38, %v459_v39 }
 0x299   : > { %v468_v41 = vmax.f32 %v467_v40, 0.0 }
 0x29b   : > { %v469_v42 = vpack.c.bf16 %v468_v41, %v468_v41 }
 0x29d   : > { %776 = vmatmul.mubr.bf16.vlgmr.msra.gmra.mrb[0].mxu1 %v469_v42 }
 0x370   : > { %v575_v44 = vpop.f32.mrb[0].mxu1 }
 0x371   : > { %v576_v45 = vadd.f32 %v708_v43, %v575_v44  ;;  %v777_v46 = vpop.f32.mrb[1].mxu1 }
 0x372   : > { %v578_v47 = vpop.f32.mrb[2].mxu1 }
 0x373   : > { %581 = vst [vmem:[%s322_s19] sm:$0xff] %v576_v45  ;;  %v778_v48 = vpop.f32.mrb[3].mxu1 }
 0x374   : > { %967 = shalt.err (!%p964_p2)
}
 0x375   : > { %s968_s12 = scalar_lea.hbm %s1296_s9, 128  ;;  %s972_s21 = scalar_lea.hbm %s1347_s7, 256 }
 0x376   : > { %p969_p13 = scmp.ne.s32.totalorder %s1296_s9, %s968_s12  ;;  %p973_p4 = scmp.lt.u32.totalorder %s1296_s9, %s1347_s7 }
 0x377   : > { %p974_p5 = scmp.lt.u32.totalorder %s972_s21, %s968_s12  ;;  %p976_p11 = scmp.lt.u32.totalorder %s968_s12, %s1296_s9 }
 0x378   : > { %p970_p6 = pnand %p969_p13, %p1361_p0 }
 0x379   : > { %p975_p8 = por %p974_p5, %p973_p4 }
 0x37a   : > { %p971_p10 = pneg %p970_p6 }
 0x37b   : > { %p977_p1 = por %p976_p11, %p975_p8 }
 0x37d   : > { %p978_p3 = pnand %p977_p1, %p971_p10 }
 0x37f   : > { %981 = shalt.err (!%p978_p3)
}
 0x380   : > { %789 = dma.vmem_to_hbm [thread:$0]  (%p1361_p0), %s1298_s23, 128, %s1296_s9, %s583_s28  }
 0x381 PF: > { %s608_s29 = sand.u32 1, %s1012_s24   ;;  %p1362_p7 = scmp.ne.s32.totalorder %s1352_s8, 0 }
 0x382   : > { %p1363_p9 = scmp.ge.s32.totalorder %s1024_s27, 2  ;;  %s609_s30 = scalar_lea.sflag [#allocation4], %s608_s29 }
 0x384   : > { %p803_p12 = pnand %p1363_p9, %p1362_p7 }
 0x386   : > { %1007 = dma.done.wait (!%p803_p12), %s609_s30, 128  }
 0x387   : > { %1009 = vsyncadd (!%p803_p12), %s609_s30, 4294967168  ;;  %p21_p2 = scmp.ge.s32.totalorder %s1184_s13, 4   ;;  %s1364_s24 = smov %s1016_s25 }
 0x388   : > { %s1365_s25 = smov %s1020_s26  ;;  %s1366_s26 = smov %s1200_s17 }
 0x389   : > { %s1367_s27 = smov %s1184_s13  ;;  %23 = sbr.rel (!%p21_p2) target bundleno = 6 (0x6), region = 101 }
 0x390   :  { %614 = vsyncpa [#allocation3], 1 }
 0x391   :  { %616 = vsyncpa [#allocation3 + $0x1], 1 }
 0x392   :  { %617 = vsyncpa [#allocation6], 1 }
 0x393   :  { %618 = vsyncpa [#allocation4], 1 }
 0x394   :  { %620 = vsyncpa [#allocation4 + $0x1], 1 }

// kernel: tpu_custom_call.1
= control target key start
LH: loop header
LB: loop body
LE: loop exit
PB: predicated region body
PF: predicated region fallthrough
CT: control target
= control target key end

     0   :  { %12 = vsyncpa [#allocation3], 0  ;;  %s1340_s0 = inlined_call_operand.hbm [shape: f32[16,128], index: 0, kind: input, shape index: {}]   ;;  %s1341_s1 = inlined_call_operand.hbm [shape: bf16[128,128], index: 1, kind: input, shape index: {}]   ;;  %s1342_s2 = inlined_call_operand.vmem [shape: f32[1,128], index: 2, kind: input, shape index: {}]   ;;  %s1343_s3 = inlined_call_operand.hbm [shape: bf16[128,128], index: 3, kind: input, shape index: {}]   ;;  %s1344_s4 = inlined_call_operand.vmem [shape: f32[1,128], index: 4, kind: input, shape index: {}]   ;;  %s1345_s5 = inlined_call_operand.vmem [shape: f32[1,128], index: 5, kind: input, shape index: {}]   ;;  %s1346_s6 = inlined_call_operand.vmem [shape: f32[1,128], index: 6, kind: input, shape index: {}]   ;;  %s1347_s7 = inlined_call_operand.hbm [shape: f32[16,128], index: 7, kind: output, shape index: {}]  }
   0x1   :  { %14 = vsyncpa [#allocation3 + $0x1], 0 }
   0x2   :  { %15 = vsyncpa [#allocation6], 0 }
   0x3   :  { %16 = vsyncpa [#allocation4], 0 }
   0x4   :  { %18 = vsyncpa [#allocation4 + $0x1], 0  ;;  %s1074_s24 = smov 0   ;;  %s1076_s25 = smov 0  }
   0x5   :  { %s1078_s26 = smov 0   ;;  %s1080_s27 = smov 0  }
   0x6 LB: > { %s1095_s28 = sadd.s32 4294967295, %s1024_s27   ;;  %s685_s29 = sadd.s32 4294967294, %s1024_s27   ;;  %s1024_s27 = sphi %s1080_s27, %s1367_s27   ;;  %s1020_s26 = sphi %s1078_s26, %s1366_s26   ;;  %s1016_s25 = sphi %s1076_s25, %s1365_s25   ;;  %s1012_s24 = sphi %s1074_s24, %s1364_s24  }
   0x7   : > { %p44_p0 = scmp.ne.s32.totalorder %s1016_s25, %s1012_s24  ;;  %p1348_p1 = scmp.eq.s32.totalorder %s1095_s28, 0 }
   0x8   : > { %p200_p3 = scmp.eq.s32.totalorder %s685_s29, 1  ;;  %p686_p5 = scmp.ge.s32.totalorder %s1024_s27, 1 }
   0x9   : > { %p1104_p4 = por %p1348_p1, %p44_p0  ;;  %p207_p7 = scmp.lt.s32.totalorder %s1024_s27, 3 }
   0xa   : > { %p1109_p6 = por %p200_p3, %p44_p0  ;;  %s1026_s10 = smov [#allocation5]  }
   0xb   : > { %s1351_s30 = scalar_select %p1104_p4, 1, 0 }
   0xc   : > { %s1352_s8 = scalar_select %p1109_p6, 1, 0 }
   0xd   : > { %p1114_p8 = pnand %p686_p5, %p207_p7  ;;  %s219_s11 = sshll.u32 %s1026_s10, 4  ;;  %s1118_s11 = int_to_ptr.vmem [resolvable:$true] %s219_s11 }
   0xe   : > { %s1027_s13 = smov [#allocation7]   ;;  %s868_s17 = scalar_lea.hbm %s1341_s1, 1024 }
   0xf   : > { %p791_p9 = pneg %p1114_p8  ;;  %s235_s14 = sshll.u32 %s1027_s13, 4  ;;  %s1129_s14 = int_to_ptr.vmem [resolvable:$true] %s235_s14 }
  0x10   : > { %p869_p12 = scmp.ne.s32.totalorder %s1341_s1, %s868_s17  ;;  %p875_p5 = scmp.lt.u32.totalorder %s868_s17, %s1341_s1 }
  0x11   : > { %p1125_p11 = pnand %p791_p9, %p1348_p1 }
  0x13   : > { %p870_p13 = pneg %p1125_p11 }
  0x15   : > { %p871_p0 = pnand %p870_p13, %p869_p12 }
  0x17   : > { %p872_p3 = pneg %p871_p0 }
  0x19   : > { %p877_p7 = pnand %p875_p5, %p872_p3 }
  0x1b   : > { %880 = shalt.err (!%p877_p7)
}
  0x1c   : > { %s881_s22 = scalar_lea.vmem %s1118_s11, 1024  ;;  %p889_p2 = scmp.lt.s32.totalorder %s1118_s11, %s1118_s11 }
  0x1d   : > { %p882_p9 = scmp.ne.s32.totalorder %s1118_s11, %s881_s22  ;;  %p890_p12 = scmp.lt.s32.totalorder %s881_s22, %s881_s22 }
  0x1f   : > { %p884_p10 = pnand %p882_p9, %p870_p13  ;;  %p891_p0 = por %p890_p12, %p889_p2 }
  0x21   : > { %p885_p1 = pneg %p884_p10 }
  0x23   : > { %p892_p6 = pnand %p891_p0, %p885_p1 }
  0x25   : > { %895 = shalt.err (!%p892_p6)
}
  0x26   : > { %s1028_s23 = smov 64   ;;  %s1029_s29 = smov 4  }
  0x27   : > { %794 = dma.hbm_to_vmem [thread:$0]  (!%p1125_p11), %s1341_s1, 1024, %s1118_s11, [#allocation6], %s1028_s23, %s1028_s23, %s1029_s29  }
  0x28   : > { %s896_s17 = scalar_lea.hbm %s1343_s3, 1024 }
  0x29   : > { %p897_p2 = scmp.ne.s32.totalorder %s1343_s3, %s896_s17  ;;  %p903_p10 = scmp.lt.u32.totalorder %s896_s17, %s1343_s3 }
  0x2b   : > { %p899_p1 = pnand %p897_p2, %p870_p13 }
  0x2d   : > { %p900_p6 = pneg %p899_p1 }
  0x2f   : > { %p905_p3 = pnand %p903_p10, %p900_p6 }
  0x31   : > { %908 = shalt.err (!%p905_p3)
}
  0x32   : > { %s909_s11 = scalar_lea.vmem %s1129_s14, 1024  ;;  %p917_p12 = scmp.lt.s32.totalorder %s1129_s14, %s1129_s14 }
  0x33   : > { %p910_p5 = scmp.ne.s32.totalorder %s1129_s14, %s909_s11  ;;  %p918_p0 = scmp.lt.s32.totalorder %s909_s11, %s909_s11 }
  0x35   : > { %p912_p7 = pnand %p910_p5, %p870_p13  ;;  %p919_p2 = por %p918_p0, %p917_p12 }
  0x37   : > { %p913_p9 = pneg %p912_p7 }
  0x39   : > { %p920_p1 = pnand %p919_p2, %p913_p9 }
  0x3b   : > { %923 = shalt.err (!%p920_p1)
}
  0x3c   : > { %797 = dma.hbm_to_vmem [thread:$0]  (!%p1125_p11), %s1343_s3, 1024, %s1129_s14, [#allocation6], %s1028_s23, %s1028_s23, %s1029_s29  }
  0x3d   : > { %s1184_s13 = sadd.s32 1, %s1024_s27   ;;  %s31_s12 = sadd.s32 1, %s1020_s26 }
  0x3e   : > { %s28_s15 = ssub.s32 %s1024_s27, %s1184_s13  ;;  %p38_p13 = scmp.ne.s32.totalorder %s1020_s26, %s1016_s25 }
  0x3f   : > { %p29_p6 = scmp.eq.s32.totalorder %s28_s15, 0  ;;  %p39_p10 = scmp.eq.s32.totalorder %s1024_s27, 0 }
  0x40   : > { %p1355_p3 = scmp.eq.s32.totalorder %s1095_s28, 1  ;;  %p808_p7 = scmp.lt.s32.totalorder %s1024_s27, 2 }
  0x41   : > { %s1200_s17 = scalar_select %p29_p6, %s1020_s26, %s31_s12  }
  0x42   : > { %p1194_p5 = por %p1355_p3, %p38_p13  ;;  %p40_p9 = por %p39_p10, %p38_p13 }
  0x43   : > { %s258_s18 = sand.u32 1, %s1020_s26   ;;  %s691_s14 = sshll.u32 %s1024_s27, 7 }
  0x44   : > { %s1356_s16 = scalar_select %p1194_p5, 1, 0 }
  0x45   : > { %s690_s19 = sshll.u32 %s258_s18, 3  ;;  %s1207_s20 = scalar_lea.hbm %s1340_s0, %s691_s14 }
  0x46   : > { %s262_s21 = scalar_lea.vmem [#allocation2], %s690_s19  ;;  %p1211_p11 = pnand %p808_p7, %p40_p9 }
  0x47   : > { %s269_s11 = sshll.u32 %s262_s21, 4  ;;  %s259_s10 = scalar_lea.sflag [#allocation3], %s258_s18  ;;  %s1209_s11 = int_to_ptr.vmem [resolvable:$true] %s269_s11 }
  0x48   : > { %s924_s12 = scalar_lea.hbm %s1207_s20, 128  ;;  %p926_p0 = pneg %p1211_p11 }
  0x49   : > { %p925_p12 = scmp.ne.s32.totalorder %s1207_s20, %s924_s12  ;;  %s929_s14 = scalar_lea.hbm %s1340_s0, 256 }
  0x4a   : > { %p930_p13 = scmp.lt.u32.totalorder %s1207_s20, %s1340_s0  ;;  %p931_p6 = scmp.lt.u32.totalorder %s929_s14, %s924_s12 }
  0x4b   : > { %p927_p2 = pnand %p926_p0, %p925_p12  ;;  %p933_p3 = scmp.lt.u32.totalorder %s924_s12, %s1207_s20 }
  0x4c   : > { %p932_p10 = por %p931_p6, %p930_p13 }
  0x4d   : > { %p928_p1 = pneg %p927_p2 }
  0x4e   : > { %p934_p7 = por %p933_p3, %p932_p10 }
  0x50   : > { %p935_p9 = pnand %p934_p7, %p928_p1 }
  0x52   : > { %938 = shalt.err (!%p935_p9)
}
  0x53   : > { %s939_s18 = scalar_lea.vmem %s1209_s11, 128  ;;  %s1030_s21 = smov [#allocation2]  }
  0x54   : > { %p940_p12 = scmp.ne.s32.totalorder %s1209_s11, %s939_s18  ;;  %s944_s15 = sshll.u32 %s1030_s21, 4  ;;  %s945_s15 = int_to_ptr.vmem [resolvable:$false] %s944_s15 }
  0x55   : > { %s946_s19 = scalar_lea.vmem %s945_s15, 256  ;;  %p947_p4 = scmp.lt.s32.totalorder %s1209_s11, %s945_s15 }
  0x56   : > { %p942_p2 = pnand %p940_p12, %p926_p0  ;;  %p948_p13 = scmp.lt.s32.totalorder %s946_s19, %s939_s18 }
  0x58   : > { %p943_p5 = pneg %p942_p2  ;;  %p949_p6 = por %p948_p13, %p947_p4 }
  0x5a   : > { %p950_p10 = pnand %p949_p6, %p943_p5 }
  0x5c   : > { %953 = shalt.err (!%p950_p10)
}
  0x5d   : > { %801 = dma.hbm_to_vmem [thread:$0]  (!%p1211_p11), %s1207_s20, 128, %s1209_s11, %s259_s10  }
  0x5e   : > { %278 = sbr.rel (%p1114_p8) target bundleno = 897 (0x381), region = 48  ;;  %s1243_s12 = sand.u32 (!%p1114_p8), 1, %s1016_s25  }
  0x5f   : > { %s693_s14 = sshll.u32 (!%p1114_p8), %s1243_s12, 3  ;;  %s281_s23 = scalar_lea.sflag (!%p1114_p8), [#allocation3], %s1243_s12 }
  0x60   : > { %s1249_s29 = scalar_lea.vmem (!%p1114_p8), [#allocation2], %s693_s14  ;;  %p1358_p4 = scmp.ne.s32.totalorder (!%p1114_p8), %s1351_s30, 0 }
  0x65   : > { %999 = dma.done.wait (%p1358_p4), %s281_s23, 128  }
  0x66   : > { %1001 = vsyncadd (%p1358_p4), %s281_s23, 4294967168  ;;  %p1359_p5 = scmp.eq.s32.totalorder %s1095_s28, 0 }
  0x68   : > { %1003 = dma.done.wait (%p1359_p5), [#allocation6], 2048   ;;  %p1360_p8 = pmov %p1359_p5 }
  0x69   : > { %v1031_v0 = vmov 0.0   ;;  %vm1032_vm0 = vmmov 0   ;;  %v850_v1 = vld [vmem:[#allocation5] sm:$0xff]   ;;  %v851_v2 = vld [vmem:[#allocation5 + $0x8] sm:$0xff]   ;;  %v852_v3 = vld [vmem:[#allocation5 + $0x10] sm:$0xff]   ;;  %v440_v19 = vlaneseq  ;;  %s718_s15 = sshll.u32 %s1095_s28, 7 }
  0x6a   : > { %1005 = vsyncadd (%p1360_p8), [#allocation6], 4294965248  ;;  %739 = vmatprep.subr.bf16.mxu0 %v1031_v0  ;;  %755 = vmatprep.mubr.msk.bf16.mxu0 %vm1032_vm0, %v1031_v0  ;;  %v853_v4 = vld [vmem:[#allocation5 + $0x18] sm:$0xff]   ;;  %v854_v5 = vld [vmem:[#allocation5 + $0x20] sm:$0xff]   ;;  %s322_s19 = scalar_lea.vmem [#allocation8], %s693_s14  ;;  %s1296_s9 = scalar_lea.hbm %s1347_s7, %s718_s15 }
  0x6b   : > { %759 = vmatprep.subr.bf16.mxu1 %v1031_v0  ;;  %775 = vmatprep.mubr.msk.bf16.mxu1 %vm1032_vm0, %v1031_v0  ;;  %v855_v6 = vld [vmem:[#allocation5 + $0x28] sm:$0xff]   ;;  %v856_v7 = vld [vmem:[#allocation5 + $0x30] sm:$0xff]   ;;  %v857_v8 = vld [vmem:[#allocation5 + $0x38] sm:$0xff]   ;;  %v441_v20 = vand.u32 127, %v440_v19  ;;  %s596_s23 = sshll.u32 %s322_s19, 4  ;;  %s583_s28 = scalar_lea.sflag [#allocation4], %s1243_s12  ;;  %s1298_s23 = int_to_ptr.vmem [resolvable:$true] %s596_s23 }
  0x6c   : > { %740 = vmatpush3.bf16.msra.mxu0 %v850_v1  ;;  %v324_v9 = vld [vmem:[%s1249_s29] sm:$0xff]  ;;  %v858_v17 = vld [vmem:[#allocation7] sm:$0xff]   ;;  %v859_v18 = vld [vmem:[#allocation7 + $0x8] sm:$0xff]   ;;  %s954_s20 = scalar_lea.vmem %s1298_s23, 128  ;;  %p1361_p0 = scmp.ne.s32.totalorder %s1356_s16, 0 }
  0x6d   : > { %741 = vmatprep.subr.bf16.mxu0 %v1031_v0  ;;  %v325_v10 = vpack.c.bf16 %v324_v9, %v324_v9  ;;  %v697_v11 = vld [vmem:[%s1342_s2] ss:$0 sm:$0xff]  ;;  %760 = vmatpush3.bf16.msra.mxu1 %v858_v17  ;;  %vm442_vm1 = vcmp.lt.s32.totalorder %v441_v20, 64  ;;  %v861_v27 = vld [vmem:[#allocation7 + $0x18] sm:$0xff]   ;;  %v862_v28 = vld [vmem:[#allocation7 + $0x20] sm:$0xff]   ;;  %p955_p11 = scmp.ne.s32.totalorder %s1298_s23, %s954_s20  ;;  %s1033_s14 = smov [#allocation8]  }
  0x6e   : > { %761 = vmatprep.subr.bf16.mxu1 %v1031_v0  ;;  %v860_v26 = vld [vmem:[#allocation7 + $0x10] sm:$0xff]   ;;  %v863_v29 = vld [vmem:[#allocation7 + $0x28] sm:$0xff]   ;;  %v865_v31 = vld [vmem:[#allocation7 + $0x38] sm:$0xff]   ;;  %s958_s11 = sshll.u32 %s1033_s14, 4  ;;  %s959_s11 = int_to_ptr.vmem [resolvable:$false] %s958_s11 }
  0x6f   : > { %v864_v30 = vld [vmem:[#allocation7 + $0x30] sm:$0xff]   ;;  %p956_p1 = pnand %p955_p11, %p1361_p0  ;;  %s960_s22 = scalar_lea.vmem %s959_s11, 256 }
  0x70   : > { %742 = vmatpush3.bf16.msra.mxu0 %v851_v2  ;;  %v706_v36 = vld [vmem:[%s1345_s5] ss:$0 sm:$0xff]  ;;  %p961_p7 = scmp.lt.s32.totalorder %s1298_s23, %s959_s11  ;;  %p962_p9 = scmp.lt.s32.totalorder %s960_s22, %s954_s20 }
  0x71   : > { %743 = vmatprep.subr.bf16.mxu0 %v1031_v0  ;;  %762 = vmatpush3.bf16.msra.mxu1 %v859_v18  ;;  %v707_v38 = vld [vmem:[%s1346_s6] ss:$0 sm:$0xff]  ;;  %p957_p3 = pneg %p956_p1 }
  0x72   : > { %763 = vmatprep.subr.bf16.mxu1 %v1031_v0  ;;  %v708_v43 = vld [vmem:[%s1344_s4] ss:$0 sm:$0xff]  ;;  %p963_p12 = por %p962_p9, %p961_p7 }
  0x74   : > { %744 = vmatpush3.bf16.msra.mxu0 %v852_v3  ;;  %p964_p2 = pnand %p963_p12, %p957_p3 }
  0x75   : > { %745 = vmatprep.subr.bf16.mxu0 %v1031_v0  ;;  %764 = vmatpush3.bf16.msra.mxu1 %v860_v26 }
  0x76   : > { %765 = vmatprep.subr.bf16.mxu1 %v1031_v0 }
  0x78   : > { %746 = vmatpush3.bf16.msra.mxu0 %v853_v4 }
  0x79   : > { %747 = vmatprep.subr.bf16.mxu0 %v1031_v0  ;;  %766 = vmatpush3.bf16.msra.mxu1 %v861_v27 }
  0x7a   : > { %767 = vmatprep.subr.bf16.mxu1 %v1031_v0 }
  0x7c   : > { %748 = vmatpush3.bf16.msra.mxu0 %v854_v5 }
  0x7d   : > { %749 = vmatprep.subr.bf16.mxu0 %v1031_v0  ;;  %768 = vmatpush3.bf16.msra.mxu1 %v862_v28 }
  0x7e   : > { %769 = vmatprep.subr.bf16.mxu1 %v1031_v0 }
  0x80   : > { %750 = vmatpush3.bf16.msra.mxu0 %v855_v6 }
  0x81   : > { %751 = vmatprep.subr.bf16.mxu0 %v1031_v0  ;;  %770 = vmatpush3.bf16.msra.mxu1 %v863_v29 }
  0x82   : > { %771 = vmatprep.subr.bf16.mxu1 %v1031_v0 }
  0x84   : > { %752 = vmatpush3.bf16.msra.mxu0 %v856_v7 }
  0x85   : > { %753 = vmatprep.subr.bf16.mxu0 %v1031_v0  ;;  %772 = vmatpush3.bf16.msra.mxu1 %v864_v30 }
  0x86   : > { %773 = vmatprep.subr.bf16.mxu1 %v1031_v0 }
  0x88   : > { %754 = vmatpush3.bf16.msra.mxu0 %v857_v8 }
  0x89   : > { %774 = vmatpush3.bf16.msra.mxu1 %v865_v31 }
  0x8b   : > { %756 = vmatmul.mubr.bf16.vlgmr.msra.gmra.mrb[0].mxu0 %v325_v10 }
 0x15e   : > { %v431_v12 = vpop.f32.mrb[0].mxu0 }
 0x15f   : > { %v432_v13 = vadd.f32 %v697_v11, %v431_v12  ;;  %v757_v14 = vpop.f32.mrb[1].mxu0 }
 0x160   : > { %v434_v15 = vpop.f32.mrb[2].mxu0 }
 0x161   : > { %437 = vadd.xlane.f32.xlu0 %v432_v13  ;;  %v758_v16 = vpop.f32.mrb[3].mxu0 }
 0x1ee   : > { %v438_v21 = vpop.xlane.xlu0 %437 }
 0x1ef   : > { %v439_v22 = vmul.f32 0.015625, %v438_v21 }
 0x1f1   : > { %v443_v23 = vsub.f32 %v432_v13, %v439_v22 }
 0x1f3   : > { %v444_v24 = vsel %vm442_vm1, %v443_v23, 0.0 }
 0x1f4   : > { %v445_v25 = vmul.f32 %v444_v24, %v444_v24 }
 0x1f6   : > { %446 = vadd.xlane.f32.xlu0 %v445_v25 }
 0x283   : > { %v447_v32 = vpop.xlane.xlu0 %446 }
 0x284   : > { %v448_v33 = vmul.f32 0.015625, %v447_v32 }
 0x286   : > { %v449_v34 = vadd.f32 1e-05, %v448_v33 }
 0x288   : > { %866 = vrsqrt.f32 %v449_v34 }
 0x292   : > { %v867_v35 = vpop.eup %866 }
 0x293   : > { %v451_v37 = vmul.f32 %v867_v35, %v444_v24 }
 0x295   : > { %v459_v39 = vmul.f32 %v706_v36, %v451_v37 }
 0x297   : > { %v467_v40 = vadd.f32 %v707_v38, %v459_v39 }
 0x299   : > { %v468_v41 = vmax.f32 %v467_v40, 0.0 }
 0x29b   : > { %v469_v42 = vpack.c.bf16 %v468_v41, %v468_v41 }
 0x29d   : > { %776 = vmatmul.mubr.bf16.vlgmr.msra.gmra.mrb[0].mxu1 %v469_v42 }
 0x370   : > { %v575_v44 = vpop.f32.mrb[0].mxu1 }
 0x371   : > { %v576_v45 = vadd.f32 %v708_v43, %v575_v44  ;;  %v777_v46 = vpop.f32.mrb[1].mxu1 }
 0x372   : > { %v578_v47 = vpop.f32.mrb[2].mxu1 }
 0x373   : > { %581 = vst [vmem:[%s322_s19] sm:$0xff] %v576_v45  ;;  %v778_v48 = vpop.f32.mrb[3].mxu1 }
 0x374   : > { %967 = shalt.err (!%p964_p2)
}
 0x375   : > { %s968_s12 = scalar_lea.hbm %s1296_s9, 128  ;;  %s972_s21 = scalar_lea.hbm %s1347_s7, 256 }
 0x376   : > { %p969_p13 = scmp.ne.s32.totalorder %s1296_s9, %s968_s12  ;;  %p973_p4 = scmp.lt.u32.totalorder %s1296_s9, %s1347_s7 }
 0x377   : > { %p974_p5 = scmp.lt.u32.totalorder %s972_s21, %s968_s12  ;;  %p976_p11 = scmp.lt.u32.totalorder %s968_s12, %s1296_s9 }
 0x378   : > { %p970_p6 = pnand %p969_p13, %p1361_p0 }
 0x379   : > { %p975_p8 = por %p974_p5, %p973_p4 }
 0x37a   : > { %p971_p10 = pneg %p970_p6 }
 0x37b   : > { %p977_p1 = por %p976_p11, %p975_p8 }
 0x37d   : > { %p978_p3 = pnand %p977_p1, %p971_p10 }
 0x37f   : > { %981 = shalt.err (!%p978_p3)
}
 0x380   : > { %789 = dma.vmem_to_hbm [thread:$0]  (%p1361_p0), %s1298_s23, 128, %s1296_s9, %s583_s28  }
 0x381 PF: > { %s608_s29 = sand.u32 1, %s1012_s24   ;;  %p1362_p7 = scmp.ne.s32.totalorder %s1352_s8, 0 }
 0x382   : > { %p1363_p9 = scmp.ge.s32.totalorder %s1024_s27, 2  ;;  %s609_s30 = scalar_lea.sflag [#allocation4], %s608_s29 }
 0x384   : > { %p803_p12 = pnand %p1363_p9, %p1362_p7 }
 0x386   : > { %1007 = dma.done.wait (!%p803_p12), %s609_s30, 128  }
 0x387   : > { %1009 = vsyncadd (!%p803_p12), %s609_s30, 4294967168  ;;  %p21_p2 = scmp.ge.s32.totalorder %s1184_s13, 4   ;;  %s1364_s24 = smov %s1016_s25 }
 0x388   : > { %s1365_s25 = smov %s1020_s26  ;;  %s1366_s26 = smov %s1200_s17 }
 0x389   : > { %s1367_s27 = smov %s1184_s13  ;;  %23 = sbr.rel (!%p21_p2) target bundleno = 6 (0x6), region = 101 }
 0x390   :  { %614 = vsyncpa [#allocation3], 1 }
 0x391   :  { %616 = vsyncpa [#allocation3 + $0x1], 1 }
 0x392   :  { %617 = vsyncpa [#allocation6], 1 }
 0x393   :  { %618 = vsyncpa [#allocation4], 1 }
 0x394   :  { %620 = vsyncpa [#allocation4 + $0x1], 1 }

</bundles_post_ra>
